<compile_context>
chip_gen: v6e
topology: v6e:2x2x1
jax: 0.10.0
libtpu: 0.0.40
codegen_flags: <defaults>
</compile_context>

<pallas_src>
import functools

import jax
import jax.numpy as jnp
from jax.experimental import pallas as pl
from jax.experimental.pallas import tpu as pltpu


def _round_up(x, m):
    return ((x + m - 1) // m) * m


def _choose_pix_tile(npix, max_tile):
    """Largest tile <= max_tile that avoids padding the pixel axis if possible."""
    if npix <= max_tile:
        return npix
    t = max_tile - (max_tile % 128)
    for cand in range(t, 127, -128):       # prefer a multiple-of-128 divisor
        if npix % cand == 0:
            return cand
    return t                               # caller pads pixel axis to this


# ----------------------------------------------------------------------------
# Pallas kernel: fused 1x1-conv (matmul) + sigmoid + YOLO box decode
# ----------------------------------------------------------------------------
def _detect_level_kernel(x_ref, w_ref, consts_ref, g_ref, out_ref, *,
                         nout_pad, compute_dtype):
    # x_ref:      (C, PIX)        one batch element's feature map, pixels on lanes
    # w_ref:      (NOUT, C)       transposed 1x1-conv weight (bf16)
    # consts_ref: (NOUT, 8)       cols: bias, a, b, mask_x, mask_y, 0, 0, 0
    # g_ref:      (2, PIX)        rows: stride*(gx-0.5), stride*(gy-0.5)
    # out_ref:    (2*NOUT, PIX)   rows [0:NOUT] raw conv out, [NOUT:2*NOUT] decoded
    x = x_ref[...].astype(compute_dtype)
    z = jnp.dot(w_ref[...], x, preferred_element_type=jnp.float32)
    z = z + consts_ref[:, 0:1]                       # + bias (broadcast on lanes)
    out_ref[0:nout_pad, :] = z

    # sigmoid via the EUP tanh slot (avoids exp + divide on the VALU path)
    s = 0.5 * jnp.tanh(0.5 * z) + 0.5

    # Per-output-row polynomial decode: dec = (a*s + b)*s + c
    #   xy rows  : a = 0,               b = 2*stride, c = stride*(grid - 0.5)
    #   wh rows  : a = 4*anchor*stride, b = 0,        c = 0
    #   conf rows: a = 0,               b = 1,        c = 0
    #   pad rows : a = b = c = 0
    a = consts_ref[:, 1:2]
    b = consts_ref[:, 2:3]
    c = consts_ref[:, 3:4] * g_ref[0:1, :] + consts_ref[:, 4:5] * g_ref[1:2, :]
    out_ref[nout_pad:2 * nout_pad, :] = (a * s + b) * s + c


def _detect_level_pallas(x3, w_t, consts, g, *, pix_tile, nout_pad, compute_dtype):
    bs, c, npix_pad = x3.shape
    nblk = npix_pad // pix_tile
    kernel = functools.partial(_detect_level_kernel, nout_pad=nout_pad,
                               compute_dtype=compute_dtype)
    return pl.pallas_call(
        kernel,
        out_shape=jax.ShapeDtypeStruct((bs, 2 * nout_pad, npix_pad), jnp.float32),
        grid=(bs, nblk),
        in_specs=[
            pl.BlockSpec((None, c, pix_tile), lambda b, p: (b, 0, p)),   # x
            pl.BlockSpec((nout_pad, c), lambda b, p: (0, 0)),            # W^T
            pl.BlockSpec((nout_pad, 8), lambda b, p: (0, 0)),            # consts
            pl.BlockSpec((2, pix_tile), lambda b, p: (0, p)),            # grid off
        ],
        out_specs=pl.BlockSpec((None, 2 * nout_pad, pix_tile),
                               lambda b, p: (b, 0, p)),
        compiler_params=pltpu.CompilerParams(
            dimension_semantics=("parallel", "parallel")),
    )(x3, w_t, consts, g)


# ----------------------------------------------------------------------------
# Detect module (inference path), Pallas-backed
# ----------------------------------------------------------------------------
class DetectPallas:
    def __init__(self, nc, anchors, ch, strides, key,
                 max_pix_tile=1024, compute_dtype=jnp.bfloat16):
        self.nc = nc
        self.no = nc + 5
        self.nl = len(anchors)
        self.na = len(anchors[0]) // 2
        self.anchors = jnp.asarray(anchors, jnp.float32).reshape(self.nl, -1, 2)
        self.strides = jnp.asarray(strides, jnp.float32)
        self.max_pix_tile = max_pix_tile          # VMEM stays well under the
        self.compute_dtype = compute_dtype        # 32 MiB scoped default on v7x

        no_na = self.na * self.no
        self.nout = no_na
        self.nout_pad = _round_up(no_na, 8)       # sublane-aligned output rows

        # Unpadded f32 parameters (kept for the pure-JAX reference).
        self.weights, self.biases = [], []        # (C, na*no) / (na*no,)
        # Kernel-side per-level parameters.
        self.w_t, self.consts = [], []            # (nout_pad, C) bf16 / (nout_pad, 8) f32

        row = jnp.arange(self.nout_pad)
        o = row % self.no
        ai = jnp.clip(row // self.no, 0, self.na - 1)
        valid = row < no_na

        for i, c in enumerate(ch):
            key, kw, kb = jax.random.split(key, 3)
            bound = 1.0 / float(c) ** 0.5         # 1x1 conv fan_in = c
            w = jax.random.uniform(kw, (c, no_na), jnp.float32, -bound, bound)
            b = jax.random.uniform(kb, (no_na,), jnp.float32, -bound, bound)
            self.weights.append(w)
            self.biases.append(b)

            wt = jnp.zeros((self.nout_pad, c), jnp.float32).at[:no_na, :].set(w.T)
            self.w_t.append(wt.astype(compute_dtype))

            s_i = self.strides[i]
            anchor_grid = self.anchors[i] * s_i                     # (na, 2) px
            bias_col = jnp.zeros((self.nout_pad,), jnp.float32).at[:no_na].set(b)
            a_col = jnp.where(valid & (o == 2), 4.0 * anchor_grid[ai, 0], 0.0)
            a_col = jnp.where(valid & (o == 3), 4.0 * anchor_grid[ai, 1], a_col)
            b_col = jnp.where(valid & (o <= 1), 2.0 * s_i, 0.0)
            b_col = jnp.where(valid & (o >= 4), 1.0, b_col)
            mx = jnp.where(valid & (o == 0), 1.0, 0.0)
            my = jnp.where(valid & (o == 1), 1.0, 0.0)
            cst = jnp.stack([bias_col, a_col, b_col, mx, my], axis=1)  # (NOUT, 5)
            self.consts.append(jnp.pad(cst, ((0, 0), (0, 3))))         # (NOUT, 8)

    def __call__(self, xs):
        """xs: list of NCHW feature maps. Returns (cat(z, 1), [x_i permuted])."""
        z_list, x_out = [], []
        for i, x in enumerate(xs):
            bs, c, ny, nx = x.shape
            npix = ny * nx
            x3 = x.reshape(bs, c, npix)            # free reshape of NCHW

            pix_tile = _choose_pix_tile(npix, self.max_pix_tile)
            npix_pad = _round_up(npix, pix_tile)

            # Per-pixel grid offsets, pre-multiplied by the level stride.
            yv, xv = jnp.meshgrid(jnp.arange(ny, dtype=jnp.float32),
                                  jnp.arange(nx, dtype=jnp.float32),
                                  indexing="ij")
            s_i = self.strides[i]
            g = jnp.stack([(xv.reshape(-1) - 0.5) * s_i,
                           (yv.reshape(-1) - 0.5) * s_i], axis=0)     # (2, npix)

            if npix_pad != npix:
                # TODO(synk): only hit when ny*nx has no multiple-of-128 divisor
                # <= max_pix_tile; costs one extra pad pass over this level.
                x3 = jnp.pad(x3, ((0, 0), (0, 0), (0, npix_pad - npix)))
                g = jnp.pad(g, ((0, 0), (0, npix_pad - npix)))

            out = _detect_level_pallas(
                x3, self.w_t[i], self.consts[i], g,
                pix_tile=pix_tile, nout_pad=self.nout_pad,
                compute_dtype=self.compute_dtype)

            if npix_pad != npix:
                out = out[..., :npix]

            nn = self.nout
            raw = out[:, :nn, :].reshape(bs, self.na, self.no, ny, nx)
            dec = out[:, self.nout_pad:self.nout_pad + nn, :].reshape(
                bs, self.na, self.no, ny, nx)
            # rows (a, o) x cols (y, x)  ->  (bs, na, ny, nx, no)
            x_out.append(raw.transpose(0, 1, 3, 4, 2))
            z_list.append(dec.transpose(0, 1, 3, 4, 2).reshape(
                bs, self.na * ny * nx, self.no))
        return jnp.concatenate(z_list, axis=1), x_out


# ----------------------------------------------------------------------------
# Pure-JAX reference (mirrors the PyTorch forward) for verification
# ----------------------------------------------------------------------------
def detect_reference(xs, det: DetectPallas):
    na, no = det.na, det.no
    z, x_out = [], []
    for i, x in enumerate(xs):
        bs, c, ny, nx = x.shape
        w, b = det.weights[i], det.biases[i]
        y = jnp.einsum("bcyx,co->boyx", x, w) + b[None, :, None, None]
        y = y.reshape(bs, na, no, ny, nx).transpose(0, 1, 3, 4, 2)
        x_out.append(y)
        s = jax.nn.sigmoid(y)
        yv, xv = jnp.meshgrid(jnp.arange(ny, dtype=jnp.float32),
                              jnp.arange(nx, dtype=jnp.float32), indexing="ij")
        grid = jnp.stack((xv, yv), axis=2)[None, None] - 0.5
        anchor_grid = (det.anchors[i] * det.strides[i]).reshape(1, na, 1, 1, 2)
        xy = (s[..., 0:2] * 2 + grid) * det.strides[i]
        wh = (s[..., 2:4] * 2) ** 2 * anchor_grid
        conf = s[..., 4:]
        yy = jnp.concatenate((xy, wh, conf), axis=4)
        z.append(yy.reshape(bs, na * ny * nx, no))
    return jnp.concatenate(z, axis=1), x_out


if __name__ == "__main__":
    key = jax.random.PRNGKey(0)

    nc = 3                                    # small class count -> no = 8
    anchors_px = [[10, 13, 16, 30, 33, 23],
                  [30, 61, 62, 45, 59, 119],
                  [116, 90, 156, 198, 373, 326]]
    strides = [8.0, 16.0, 32.0]
    anchors = [[a / s for a in lvl] for lvl, s in zip(anchors_px, strides)]
    ch = (4, 8, 16)
    spatial = (16, 8, 4)
    bs = 2

    key, kparams = jax.random.split(key)
    det = DetectPallas(nc=nc, anchors=anchors, ch=ch, strides=strides,
                       key=kparams)

    xs = []
    for c, s in zip(ch, spatial):
        key, kx = jax.random.split(key)
        xs.append(jax.random.normal(kx, (bs, c, s, s), jnp.float32))

    pred, feats = det(xs)
    pred = jax.block_until_ready(pred)
    feats = [jax.block_until_ready(f) for f in feats]

    pred_ref, feats_ref = detect_reference(xs, det)
    assert pred.shape == pred_ref.shape
    # Kernel matmul runs in bf16 (f32 accumulation); decoded coords are in
    # pixel units (scaled by stride / anchors), so allow <=0.1 px absolute.
    assert jnp.allclose(pred, pred_ref, atol=1e-1, rtol=2e-2)
    for f, fr in zip(feats, feats_ref):
        assert f.shape == fr.shape
        assert jnp.allclose(f, fr, atol=2e-2, rtol=2e-2)

    print("KERNEL_OK")
</pallas_src>

<mosaic_0001>
module attributes {stable_mosaic.version = 11 : i64} {
  func.func @_detect_level_kernel(%arg0: i32, %arg1: i32, %arg2: memref<1x4x256xf32, #tpu.memory_space<vmem>>, %arg3: memref<24x4xbf16, #tpu.memory_space<vmem>>, %arg4: memref<24x8xf32, #tpu.memory_space<vmem>>, %arg5: memref<2x256xf32, #tpu.memory_space<vmem>>, %arg6: memref<1x48x256xf32, #tpu.memory_space<vmem>>) attributes {dimension_semantics = [#tpu.dimension_semantics<parallel>, #tpu.dimension_semantics<parallel>], iteration_bounds = array<i64: 2, 1>, scalar_prefetch = 0 : i64, scratch_operands = 0 : i64, tpu.core_type = #tpu.core_type<tc>, window_params = [{transform_indices = @transform_0, window_bounds = array<i64: 1, 4, 256>}, {pipeline_mode = #tpu.pipeline_mode<synchronous>, transform_indices = @transform_1, window_bounds = array<i64: 24, 4>}, {pipeline_mode = #tpu.pipeline_mode<synchronous>, transform_indices = @transform_2, window_bounds = array<i64: 24, 8>}, {transform_indices = @transform_3, window_bounds = array<i64: 2, 256>}, {transform_indices = @transform_4, window_bounds = array<i64: 1, 48, 256>}]} {
    %c0 = arith.constant 0 : index
    %c0_0 = arith.constant 0 : index
    %c0_1 = arith.constant 0 : index
    %0 = vector.load %arg2[%c0, %c0_0, %c0_1] : memref<1x4x256xf32, #tpu.memory_space<vmem>>, vector<1x4x256xf32>
    %1 = vector.shape_cast %0 : vector<1x4x256xf32> to vector<4x256xf32>
    %2 = arith.truncf %1 : vector<4x256xf32> to vector<4x256xbf16>
    %c0_2 = arith.constant 0 : index
    %c0_3 = arith.constant 0 : index
    %3 = vector.load %arg3[%c0_2, %c0_3] : memref<24x4xbf16, #tpu.memory_space<vmem>>, vector<24x4xbf16>
    %cst = arith.constant dense<0.000000e+00> : vector<24x256xf32>
    %4 = tpu.matmul %3, %2, %cst {dimension_numbers = #tpu.dot_dimension_numbers<[1], [0], [0], [1], [0, 0, 1, 1], [], []>} : vector<24x4xbf16>, vector<4x256xbf16>, vector<24x256xf32> -> vector<24x256xf32>
    %c0_4 = arith.constant 0 : index
    %c0_5 = arith.constant 0 : index
    %5 = vector.load %arg4[%c0_4, %c0_5] : memref<24x8xf32, #tpu.memory_space<vmem>>, vector<24x1xf32>
    %6 = vector.broadcast %5 : vector<24x1xf32> to vector<24x256xf32>
    %7 = arith.addf %4, %6 : vector<24x256xf32>
    %c0_6 = arith.constant 0 : index
    %c0_7 = arith.constant 0 : index
    %c0_8 = arith.constant 0 : index
    %8 = vector.load %arg6[%c0_6, %c0_7, %c0_8] : memref<1x48x256xf32, #tpu.memory_space<vmem>>, vector<1x24x256xf32>
    %9 = vector.shape_cast %8 : vector<1x24x256xf32> to vector<24x256xf32>
    %10 = vector.shape_cast %7 : vector<24x256xf32> to vector<1x24x256xf32>
    tpu.vector_store %arg6[%c0_6, %c0_7, %c0_8], %10 {strides = array<i32>} : memref<1x48x256xf32, #tpu.memory_space<vmem>>, vector<1x24x256xf32>,
    %cst_9 = arith.constant 5.000000e-01 : f32
    %11 = vector.broadcast %cst_9 : f32 to vector<24x256xf32>
    %12 = arith.mulf %11, %7 : vector<24x256xf32>
    %13 = math.tanh %12 : vector<24x256xf32>
    %cst_10 = arith.constant 5.000000e-01 : f32
    %14 = vector.broadcast %cst_10 : f32 to vector<24x256xf32>
    %15 = arith.mulf %14, %13 : vector<24x256xf32>
    %cst_11 = arith.constant 5.000000e-01 : f32
    %16 = vector.broadcast %cst_11 : f32 to vector<24x256xf32>
    %17 = arith.addf %15, %16 : vector<24x256xf32>
    %c0_12 = arith.constant 0 : index
    %c1 = arith.constant 1 : index
    %18 = vector.load %arg4[%c0_12, %c1] : memref<24x8xf32, #tpu.memory_space<vmem>>, vector<24x1xf32>
    %c0_13 = arith.constant 0 : index
    %c2 = arith.constant 2 : index
    %19 = vector.load %arg4[%c0_13, %c2] : memref<24x8xf32, #tpu.memory_space<vmem>>, vector<24x1xf32>
    %c0_14 = arith.constant 0 : index
    %c3 = arith.constant 3 : index
    %20 = vector.load %arg4[%c0_14, %c3] : memref<24x8xf32, #tpu.memory_space<vmem>>, vector<24x1xf32>
    %c0_15 = arith.constant 0 : index
    %c0_16 = arith.constant 0 : index
    %21 = vector.load %arg5[%c0_15, %c0_16] : memref<2x256xf32, #tpu.memory_space<vmem>>, vector<1x256xf32>
    %22 = vector.broadcast %20 : vector<24x1xf32> to vector<24x256xf32>
    %23 = vector.broadcast %21 : vector<1x256xf32> to vector<24x256xf32>
    %24 = arith.mulf %22, %23 : vector<24x256xf32>
    %c0_17 = arith.constant 0 : index
    %c4 = arith.constant 4 : index
    %25 = vector.load %arg4[%c0_17, %c4] : memref<24x8xf32, #tpu.memory_space<vmem>>, vector<24x1xf32>
    %c1_18 = arith.constant 1 : index
    %c0_19 = arith.constant 0 : index
    %26 = vector.load %arg5[%c1_18, %c0_19] : memref<2x256xf32, #tpu.memory_space<vmem>>, vector<1x256xf32>
    %27 = vector.broadcast %25 : vector<24x1xf32> to vector<24x256xf32>
    %28 = vector.broadcast %26 : vector<1x256xf32> to vector<24x256xf32>
    %29 = arith.mulf %27, %28 : vector<24x256xf32>
    %30 = arith.addf %24, %29 : vector<24x256xf32>
    %31 = vector.broadcast %18 : vector<24x1xf32> to vector<24x256xf32>
    %32 = arith.mulf %31, %17 : vector<24x256xf32>
    %33 = vector.broadcast %19 : vector<24x1xf32> to vector<24x256xf32>
    %34 = arith.addf %32, %33 : vector<24x256xf32>
    %35 = arith.mulf %34, %17 : vector<24x256xf32>
    %36 = arith.addf %35, %30 : vector<24x256xf32>
    %c0_20 = arith.constant 0 : index
    %c24 = arith.constant 24 : index
    %c0_21 = arith.constant 0 : index
    %37 = vector.load %arg6[%c0_20, %c24, %c0_21] : memref<1x48x256xf32, #tpu.memory_space<vmem>>, vector<1x24x256xf32>
    %38 = vector.shape_cast %37 : vector<1x24x256xf32> to vector<24x256xf32>
    %39 = vector.shape_cast %36 : vector<24x256xf32> to vector<1x24x256xf32>
    tpu.vector_store %arg6[%c0_20, %c24, %c0_21], %39 {strides = array<i32>} : memref<1x48x256xf32, #tpu.memory_space<vmem>>, vector<1x24x256xf32>,
    return
  }
  func.func @transform_0(%arg0: i32, %arg1: i32) -> (i32, i32, i32) {
    %c0_i32 = arith.constant 0 : i32
    %c0_i32_0 = arith.constant 0 : i32
    return %arg0, %c0_i32, %arg1 : i32, i32, i32
  }
  func.func @transform_1(%arg0: i32, %arg1: i32) -> (i32, i32) {
    %c0_i32 = arith.constant 0 : i32
    %c0_i32_0 = arith.constant 0 : i32
    %c0_i32_1 = arith.constant 0 : i32
    return %c0_i32, %c0_i32_0 : i32, i32
  }
  func.func @transform_2(%arg0: i32, %arg1: i32) -> (i32, i32) {
    %c0_i32 = arith.constant 0 : i32
    %c0_i32_0 = arith.constant 0 : i32
    %c0_i32_1 = arith.constant 0 : i32
    return %c0_i32, %c0_i32_0 : i32, i32
  }
  func.func @transform_3(%arg0: i32, %arg1: i32) -> (i32, i32) {
    %c0_i32 = arith.constant 0 : i32
    %c0_i32_0 = arith.constant 0 : i32
    return %c0_i32, %arg1 : i32, i32
  }
  func.func @transform_4(%arg0: i32, %arg1: i32) -> (i32, i32, i32) {
    %c0_i32 = arith.constant 0 : i32
    %c0_i32_0 = arith.constant 0 : i32
    return %arg0, %c0_i32, %arg1 : i32, i32, i32
  }
}

</mosaic_0001>

<bundles_post_ra>
// kernel: tpu_custom_call.1
= control target key start
LH: loop header
LB: loop body
LE: loop exit
PB: predicated region body
PF: predicated region fallthrough
CT: control target
= control target key end

     0   :  { %9 = vsyncpa [#allocation3], 0  ;;  %s1003_s0 = inlined_call_operand.vmem [shape: f32[2,4,256], index: 0, kind: input, shape index: {}]   ;;  %s1004_s1 = inlined_call_operand.vmem [shape: bf16[24,4], index: 1, kind: input, shape index: {}]   ;;  %s1005_s2 = inlined_call_operand.vmem [shape: f32[24,8], index: 2, kind: input, shape index: {}]   ;;  %s1006_s3 = inlined_call_operand.vmem [shape: f32[2,256], index: 3, kind: input, shape index: {}]   ;;  %s1007_s4 = inlined_call_operand.hbm [shape: f32[2,48,256], index: 4, kind: output, shape index: {}]  }
   0x1   :  { %11 = vsyncpa [#allocation3 + $0x1], 0  ;;  %s837_s15 = smov 0   ;;  %s839_s16 = smov 0  }
   0x2   :  { %s841_s17 = smov 0   ;;  %s843_s18 = smov 0  }
   0x3   :  { %s845_s19 = smov 0   ;;  %s847_s20 = smov 0  }
   0x4 LB: > { %s617_s21 = sadd.s32 4294967295, %s802_s20   ;;  %s618_s22 = sadd.s32 4294967294, %s802_s20   ;;  %s802_s20 = sphi %s847_s20, %s17_s20   ;;  %s798_s19 = sphi %s845_s19, %s1014_s19   ;;  %s794_s18 = sphi %s843_s18, %s1013_s18   ;;  %s790_s17 = sphi %s841_s17, %s1012_s17   ;;  %s786_s16 = sphi %s839_s16, %s1011_s16   ;;  %s782_s15 = sphi %s837_s15, %s1010_s15  }
   0x5   : > { %s29_s23 = sadd.s32 1, %s798_s19  ;;  %s134_s24 = sadd.s32 1, %s790_s17 }
   0x6   : > { %p31_p0 = scmp.ge.s32.totalorder %s29_s23, 2  ;;  %p144_p1 = scmp.ne.s32.totalorder %s790_s17, %s786_s16 }
   0x7   : > { %p145_p2 = scmp.eq.s32.totalorder %s617_s21, 1  ;;  %p150_p3 = scmp.ne.s32.totalorder %s786_s16, %s782_s15 }
   0x8   : > { %s1016_s23 = smov (%p31_p0, %s29_s23), 0  ;;  %p151_p5 = scmp.eq.s32.totalorder %s618_s22, 1 }
   0x9   : > { %p877_p4 = por %p145_p2, %p144_p1  ;;  %s129_s26 = ssub.s32 %s798_s19, %s1016_s23 }
   0xa   : > { %p622_p6 = scmp.ge.s32.totalorder %s802_s20, 1  ;;  %p132_p7 = scmp.eq.s32.totalorder %s129_s26, 0 }
   0xb   : > { %p884_p8 = por %p151_p5, %p150_p3  ;;  %p197_p9 = scmp.lt.s32.totalorder %s802_s20, 3 }
   0xc   : > { %s890_s28 = scalar_select %p132_p7, %s790_s17, %s134_s24  }
   0xd   : > { %p198_p10 = pnand %p622_p6, %p197_p9 }
   0xe   : > { %p233_p11 = scmp.lt.s32.totalorder (!%p198_p10), %s794_s18, 1  ;;  %s229_s26 = sand.u32 (!%p198_p10), 1, %s786_s16  }
   0xf   : > { %201 = sbr.rel (%p198_p10) target bundleno = 276 (0x114), region = 36  ;;  %s809_s21 = smov (!%p198_p10), [#allocation2]  }
  0x10   : > { %s637_s29 = smul.u32 (!%p198_p10), 96, %s229_s26  ;;  %s730_s22 = sshll.u32 (!%p198_p10), %s809_s21, 4  ;;  %s731_s22 = int_to_ptr.vmem [resolvable:$false] %s730_s22 }
  0x11   : > { %s638_s9 = smul.u32 (!%p198_p10), 1536, %s794_s18  ;;  %s732_s24 = scalar_lea.vmem (!%p198_p10), %s731_s22, 3072 }
  0x12   : > { %s919_s30 = scalar_lea.vmem (!%p198_p10), [#allocation2], %s637_s29 }
  0x13   : > { %s523_s10 = sshll.u32 (!%p198_p10), %s919_s30, 4  ;;  %s953_s10 = int_to_ptr.vmem [resolvable:$true] %s523_s10 }
  0x14   : > { %v804_v0 = vmov 0   ;;  %v261_v1 = vld [vmem:[%s1005_s2 + $0x10] sm:$0xff]  ;;  %s234_s5 = scalar_select %p233_p11, %s794_s18, 1  ;;  %v380_v2 = vld [vmem:[%s1005_s2] sm:$0xff]  ;;  %v260_v3 = vld [vmem:[%s1005_s2 + $0x8] sm:$0xff]  ;;  %vm292_vm0 = vcmask 1041408   ;;  %v400_v25 = vlaneseq }
  0x15   : > { %331 = vmatprep.mubr.bf16.mxu0 %v804_v0  ;;  %341 = vmatprep.mubr.bf16.mxu1 %v804_v0  ;;  %v805_v7 = vmov 1   ;;  %v712_v10 = vld [vmem:[%s1004_s1] sm:$0xff]   ;;  %v713_v11 = vld [vmem:[%s1004_s1 + $0x8] ss:$0 sps:$4 sm:$0xff]   ;;  %vm285_vm1 = vcmask 31744   ;;  %v806_v12 = vmov 3   ;;  %s950_s18 = scalar_lea.hbm %s1007_s4, %s638_s9  ;;  %p733_p1 = scmp.lt.s32.totalorder %s953_s10, %s731_s22 }
  0x16   : > { %702 = vset.pattern.permute.xlu1 %v804_v0  ;;  %701 = vset.pattern.permute.xlu0 %v804_v0  ;;  %s634_s8 = sshll.u32 %s234_s5, 3  ;;  %v807_v13 = vmov 4   ;;  %v808_v14 = vmov 2   ;;  %v401_v40 = vshrl.u32 %v400_v25, 7  ;;  %s726_s14 = scalar_lea.vmem %s953_s10, 1536 }
  0x17   : > { %274 = vperm.xlu1 %702, %v261_v1   ;;  %264 = vperm.xlu0 %701, %v380_v2   ;;  %s240_s13 = scalar_lea.vmem %s1003_s0, %s634_s8  ;;  %v383_v47 = vld [vmem:[%s1006_s3] ss:$2 sm:$0x3]  ;;  %v630_v52 = vld [vmem:[%s1006_s3 + $0x1] ss:$2 sm:$0x3]  ;;  %p727_p12 = scmp.ne.s32.totalorder %s953_s10, %s726_s14 }
  0x18   : > { %v250_v4 = vld [vmem:[%s240_s13] sm:$0xff]  ;;  %v402_v46 = vsub.s32 0, %v401_v40  ;;  %v406_v48 = vsub.s32 1, %v401_v40  ;;  %s958_s13 = scalar_lea.sflag [#allocation3], %s229_s26  ;;  %p734_p2 = scmp.lt.s32.totalorder %s732_s24, %s726_s14 }
  0x19   : > { %v252_v5 = vcombine.high %v250_v4, %v250_v4  ;;  %v254_v6 = vpack.c.bf16 %v250_v4, %v250_v4  ;;  %p728_p13 = pnand %p727_p12, %p877_p4 }
  0x1a   : > { %v403_v51 = vrot.slane %v383_v47, %v402_v46  ;;  %v407_v53 = vrot.slane %v383_v47, %v406_v48  ;;  %v434_v56 = vrot.slane %v630_v52, %v402_v46  ;;  %v438_v59 = vrot.slane %v630_v52, %v406_v48  ;;  %p735_p3 = por %p734_p2, %p733_p1 }
  0x1b   : > { %703 = vset.pattern.permute.xlu1 %v805_v7  ;;  %269 = vperm.xlu0 %701, %v260_v3   ;;  %v255_v8 = vpack.c.bf16 %v252_v5, %v252_v5  ;;  %v294_v9 = vsel %vm292_vm0, %v254_v6, 0  ;;  %p729_p0 = pneg %p728_p13 }
  0x1c   : > { %454 = vperm.xlu1 %703, %v380_v2  }
  0x1d   : > { %627 = vmatprep.subr.msk.bf16.mxu0 %vm292_vm0, %v255_v8  ;;  %635 = vmatprep.subr.msk.bf16.mxu1 %vm292_vm0, %v255_v8  ;;  %p736_p5 = pnand %p735_p3, %p729_p0 }
  0x1e   : > { %314 = vmatpush1.bf16.msra.mxu0 %v294_v9  ;;  %636 = vmatpush1.bf16.msra.mxu1 %v294_v9 }
  0x1f   : > { %704 = vset.pattern.permute.xlu0 %v805_v7 }
  0x20   : > { %462 = vperm.xlu1 %703, %v261_v1   ;;  %458 = vperm.xlu0 %704, %v260_v3  }
  0x21   : > { %628 = vmatmul.mubr.msk.bf16.vlgmr.msra.gmra.mxu0 %vm285_vm1, %v712_v10  ;;  %629 = vmatmul.mubr.msk.bf16.vlgmr.msra.gmra.mxu1 %vm285_vm1, %v713_v11 }
  0x24   : > { %705 = vset.pattern.permute.xlu1 %v806_v12  ;;  %706 = vset.pattern.permute.xlu0 %v806_v12 }
  0x25   : > { %386 = vperm.xlu1 %705, %v380_v2   ;;  %391 = vperm.xlu0 %706, %v260_v3  }
  0x29   : > { %396 = vperm.xlu1 %705, %v261_v1   ;;  %708 = vset.pattern.permute.xlu0 %v807_v13 }
  0x2a   : > { %423 = vperm.xlu0 %708, %v260_v3  }
  0x2d   : > { %707 = vset.pattern.permute.xlu1 %v807_v13 }
  0x2e   : > { %419 = vperm.xlu1 %707, %v380_v2   ;;  %710 = vset.pattern.permute.xlu0 %v808_v14 }
  0x2f   : > { %476 = vperm.xlu0 %710, %v260_v3  }
  0x32   : > { %427 = vperm.xlu1 %707, %v261_v1  }
  0x36   : > { %709 = vset.pattern.permute.xlu1 %v808_v14 }
  0x37   : > { %472 = vperm.xlu1 %709, %v380_v2  }
  0x3b   : > { %480 = vperm.xlu1 %709, %v261_v1  }
  0x92   : > { %v275_v15 = vpop.permute.xlu1 %274  ;;  %v265_v19 = vpop.permute.xlu0 %264 }
  0x96   : > { %v270_v30 = vpop.permute.xlu0 %269 }
  0x97   : > { %v912_v16 = vpop.permute.xlu1 %454 }
  0x9b   : > { %v914_v17 = vpop.permute.xlu1 %462  ;;  %v926_v44 = vpop.permute.xlu0 %458 }
  0xa0   : > { %v387_v18 = vpop.permute.xlu1 %386  ;;  %v392_v50 = vpop.permute.xlu0 %391 }
  0xa1   : > { %v410_v58 = vmul.f32 %v403_v51, %v387_v18  ;;  %v411_v63 = vmul.f32 %v407_v53, %v387_v18  ;;  %v412_v0 = vmul.f32 %v403_v51, %v392_v50  ;;  %v413_v1 = vmul.f32 %v407_v53, %v392_v50 }
  0xa4   : > { %v397_v22 = vpop.permute.xlu1 %396 }
  0xa5   : > { %v424_v61 = vpop.permute.xlu0 %423  ;;  %v414_v4 = vmul.f32 %v403_v51, %v397_v22  ;;  %v415_v5 = vmul.f32 %v407_v53, %v397_v22 }
  0xa6   : > { %v443_v10 = vmul.f32 %v434_v56, %v424_v61 }
  0xa9   : > { %v420_v41 = vpop.permute.xlu1 %419 }
  0xaa   : > { %v441_v9 = vmul.f32 %v434_v56, %v420_v41 }
  0xad   : > { %v428_v49 = vpop.permute.xlu1 %427 }
  0xb2   : > { %v473_v54 = vpop.permute.xlu1 %472 }
  0xe1   : > { %v333_v20 = vpop.f32.mrf.mxu0  ;;  %v343_v21 = vpop.f32.mrf.mxu1 }
  0xe2   : > { %v334_v23 = vadd.f32 %v333_v20, %v265_v19  ;;  %v344_v24 = vadd.f32 %v343_v21, %v275_v15  ;;  %v481_v20 = vpop.permute.xlu1 %480  ;;  %v442_v21 = vmul.f32 %v438_v59, %v420_v41 }
  0xe3   : > { %v335_v26 = vpop.f32.mrf.mxu0  ;;  %v345_v27 = vpop.f32.mrf.mxu1 }
  0xe4   : > { %350 = vst [vmem:[%s919_s30] sm:$0xff] %v334_v23  ;;  %v356_v28 = vmul.f32 0.5, %v334_v23  ;;  %354 = vst [vmem:[%s919_s30 + $0x20] sm:$0xff] %v344_v24  ;;  %v360_v29 = vmul.f32 0.5, %v344_v24  ;;  %v336_v31 = vadd.f32 %v335_v26, %v265_v19  ;;  %v346_v32 = vadd.f32 %v345_v27, %v275_v15 }
  0xe5   : > { %v337_v33 = vpop.f32.mrf.mxu0  ;;  %v347_v34 = vpop.f32.mrf.mxu1  ;;  %v444_v19 = vmul.f32 %v438_v59, %v424_v61  ;;  %v445_v23 = vmul.f32 %v434_v56, %v428_v49 }
  0xe6   : > { %714 = vtanh.f32 %v356_v28  ;;  %351 = vst [vmem:[%s919_s30 + $0x8] sm:$0xff] %v336_v31  ;;  %v357_v35 = vmul.f32 0.5, %v336_v31  ;;  %355 = vst [vmem:[%s919_s30 + $0x28] sm:$0xff] %v346_v32  ;;  %v361_v36 = vmul.f32 0.5, %v346_v32  ;;  %v338_v37 = vadd.f32 %v337_v33, %v270_v30  ;;  %v477_v33 = vpop.permute.xlu0 %476 }
  0xe7   : > { %716 = vtanh.f32 %v360_v29  ;;  %v339_v38 = vpop.f32.mrf.mxu0  ;;  %v348_v39 = vpop.f32.mrf.mxu1  ;;  %v447_v29 = vadd.f32 %v441_v9, %v410_v58 }
  0xe8   : > { %718 = vtanh.f32 %v357_v35  ;;  %352 = vst [vmem:[%s919_s30 + $0x10] sm:$0xff] %v338_v37  ;;  %v358_v42 = vmul.f32 0.5, %v338_v37  ;;  %v340_v43 = vadd.f32 %v339_v38, %v270_v30  ;;  %v446_v30 = vmul.f32 %v438_v59, %v428_v49 }
  0xe9   : > { %720 = vtanh.f32 %v361_v36  ;;  %v448_v38 = vadd.f32 %v442_v21, %v411_v63  ;;  %v451_v39 = vadd.f32 %v445_v23, %v414_v4  ;;  %v449_v49 = vadd.f32 %v443_v10, %v412_v0 }
  0xea   : > { %722 = vtanh.f32 %v358_v42  ;;  %353 = vst [vmem:[%s919_s30 + $0x18] sm:$0xff] %v340_v43  ;;  %v359_v45 = vmul.f32 0.5, %v340_v43 }
  0xec   : > { %724 = vtanh.f32 %v359_v45  ;;  %v452_v45 = vadd.f32 %v446_v30, %v415_v5 }
  0xf3   : > { %v715_v55 = vpop.eup %714 }
  0xf4   : > { %v717_v57 = vpop.eup %716  ;;  %v368_v60 = vmul.f32 0.5, %v715_v55 }
  0xf5   : > { %v719_v62 = vpop.eup %718  ;;  %v372_v2 = vmul.f32 0.5, %v717_v57 }
  0xf6   : > { %v721_v3 = vpop.eup %720  ;;  %v369_v6 = vmul.f32 0.5, %v719_v62  ;;  %v374_v7 = vadd.f32 0.5, %v368_v60 }
  0xf7   : > { %v723_v8 = vpop.eup %722  ;;  %v373_v11 = vmul.f32 0.5, %v721_v3  ;;  %v378_v12 = vadd.f32 0.5, %v372_v2 }
  0xf8   : > { %v370_v13 = vmul.f32 0.5, %v723_v8  ;;  %v375_v14 = vadd.f32 0.5, %v369_v6  ;;  %v465_v15 = vmul.f32 %v912_v16, %v374_v7 }
  0xf9   : > { %v725_v18 = vpop.eup %724  ;;  %v379_v24 = vadd.f32 0.5, %v373_v11  ;;  %v469_v25 = vmul.f32 %v914_v17, %v378_v12 }
  0xfa   : > { %v371_v22 = vmul.f32 0.5, %v725_v18  ;;  %v376_v26 = vadd.f32 0.5, %v370_v13  ;;  %v466_v27 = vmul.f32 %v912_v16, %v375_v14  ;;  %v483_v28 = vadd.f32 %v473_v54, %v465_v15 }
  0xfb   : > { %v470_v31 = vmul.f32 %v914_v17, %v379_v24  ;;  %v487_v32 = vadd.f32 %v481_v20, %v469_v25 }
  0xfc   : > { %v377_v34 = vadd.f32 0.5, %v371_v22  ;;  %v467_v35 = vmul.f32 %v926_v44, %v376_v26  ;;  %v484_v36 = vadd.f32 %v473_v54, %v466_v27  ;;  %v489_v37 = vmul.f32 %v483_v28, %v374_v7 }
  0xfd   : > { %v488_v40 = vadd.f32 %v481_v20, %v470_v31  ;;  %v493_v41 = vmul.f32 %v487_v32, %v378_v12 }
  0xfe   : > { %v468_v16 = vmul.f32 %v926_v44, %v377_v34  ;;  %v490_v42 = vmul.f32 %v484_v36, %v375_v14  ;;  %v495_v17 = vadd.f32 %v489_v37, %v447_v29  ;;  %v485_v43 = vadd.f32 %v477_v33, %v467_v35 }
  0xff   : > { %v494_v46 = vmul.f32 %v488_v40, %v379_v24  ;;  %v499_v47 = vadd.f32 %v493_v41, %v451_v39  ;;  %v450_v44 = vadd.f32 %v444_v19, %v413_v1 }
 0x100   : > { %v496_v48 = vadd.f32 %v490_v42, %v448_v38  ;;  %501 = vst [vmem:[%s919_s30 + $0x30] sm:$0xff] %v495_v17  ;;  %v486_v50 = vadd.f32 %v477_v33, %v468_v16  ;;  %v491_v51 = vmul.f32 %v485_v43, %v376_v26 }
 0x101   : > { %v500_v52 = vadd.f32 %v494_v46, %v452_v45  ;;  %505 = vst [vmem:[%s919_s30 + $0x50] sm:$0xff] %v499_v47 }
 0x102   : > { %502 = vst [vmem:[%s919_s30 + $0x38] sm:$0xff] %v496_v48  ;;  %v492_v53 = vmul.f32 %v486_v50, %v377_v34  ;;  %v497_v54 = vadd.f32 %v491_v51, %v449_v49 }
 0x103   : > { %506 = vst [vmem:[%s919_s30 + $0x58] sm:$0xff] %v500_v52 }
 0x104   : > { %v498_v55 = vadd.f32 %v492_v53, %v450_v44  ;;  %503 = vst [vmem:[%s919_s30 + $0x40] sm:$0xff] %v497_v54 }
 0x106   : > { %504 = vst [vmem:[%s919_s30 + $0x48] sm:$0xff] %v498_v55 }
 0x107   : > { %739 = shalt.err (!%p736_p5)
}
 0x108   : > { %s740_s26 = scalar_lea.hbm %s950_s18, 1536  ;;  %s744_s5 = scalar_lea.hbm %s1007_s4, 3072 }
 0x109   : > { %p741_p6 = scmp.ne.s32.totalorder %s950_s18, %s740_s26  ;;  %p745_p10 = scmp.lt.s32.totalorder %s950_s18, %s1007_s4 }
 0x10a   : > { %p746_p11 = scmp.lt.s32.totalorder %s744_s5, %s740_s26 }
 0x10b   : > { %p742_p7 = pnand %p741_p6, %p877_p4 }
 0x10c   : > { %p747_p12 = por %p746_p11, %p745_p10 }
 0x10d   : > { %p743_p9 = pneg %p742_p7 }
 0x10f   : > { %p748_p13 = pnand %p747_p12, %p743_p9 }
 0x111   : > { %751 = shalt.err (!%p748_p13)
}
 0x112   : > { %s810_s8 = smov 256   ;;  %s811_s9 = smov 16  }
 0x113   : > { %639 = dma.vmem_to_hbm [thread:$0]  (%p877_p4), %s953_s10, 1536, %s950_s18, %s958_s13, %s810_s8, %s810_s8, %s811_s9  }
 0x114 PF: > { %p645_p0 = scmp.ge.s32.totalorder %s802_s20, 2  ;;  %s538_s11 = sand.u32 1, %s782_s15  }
 0x115   : > { %s539_s12 = scalar_lea.sflag [#allocation3], %s538_s11 }
 0x116   : > { %p642_p1 = pnand %p645_p0, %p884_p8 }
 0x118   : > { %p643_p2 = pneg %p642_p1 }
 0x11a   : > { %777 = dma.done.wait (%p643_p2), %s539_s12, 1536  }
 0x11b   : > { %779 = vsyncadd (%p643_p2), %s539_s12, 4294965760  ;;  %s17_s20 = sadd.s32 1, %s802_s20   ;;  %s1010_s15 = smov %s786_s16 }
 0x11c   : > { %p14_p3 = scmp.ge.s32.totalorder %s17_s20, 4   ;;  %s1011_s16 = smov %s790_s17 }
 0x11d   : > { %s1012_s17 = smov %s890_s28  ;;  %s1013_s18 = smov %s798_s19 }
 0x11e   : > { %s1014_s19 = smov %s1016_s23  ;;  %16 = sbr.rel (!%p14_p3) target bundleno = 4 (0x4), region = 75 }
 0x123   :  { %544 = vsyncpa [#allocation3], 1 }
 0x124   :  { %546 = vsyncpa [#allocation3 + $0x1], 1 }

</bundles_post_ra>
